<compile_context>
chip_gen: v7x
topology: tpu7x:2x2x1
jax: 0.10.0
libtpu: 0.0.40
codegen_flags: <defaults>
</compile_context>

<pallas_src>
import functools

import jax
import jax.numpy as jnp
from jax.experimental import pallas as pl
from jax.experimental.pallas import tpu as pltpu

_LANE = 128      # TPU vreg lane width
_SUBLANE = 8     # TPU vreg sublane count (f32)
_HIDDEN = 256
_NUM_CLASSES = 2


def _round_up(n, m):
    return ((n + m - 1) // m) * m


def _sas_kernel(x_ref, w1_ref, b1_ref, w2_ref, b2_ref, out_ref):
    # x:  (tm, Dp)  bf16   w1: (Dp, H)  bf16   b1: (1, H)  f32
    # w2: (H, Np)   bf16   b2: (1, Np)  f32    out: (tm, Np) f32
    # First linear: bf16 operands on the MXU, f32 accumulation.
    h = jnp.dot(x_ref[...], w1_ref[...], preferred_element_type=jnp.float32)
    # Bias add + ReLU stay in f32 on the VPU (v5e has no bf16 VALU).
    h = jnp.maximum(h + b1_ref[...], 0.0)
    # Second linear: feed the MXU bf16 again, accumulate in f32.
    h = h.astype(w2_ref.dtype)
    logit = jnp.dot(h, w2_ref[...], preferred_element_type=jnp.float32)
    out_ref[...] = (logit + b2_ref[...]).astype(out_ref.dtype)


def prepare_params(w1, b1, w2, b2):
    """One-time padding + bf16 cast of the classifier weights.

    w1: (d_in, H) -> (Dp, H) bf16 (zero-padded rows, Dp = round_up(d_in, 128))
    w2: (H, 2)    -> (H, 128) bf16 (zero-padded cols, lane-dense output)
    b1: (H,)      -> (1, H)   f32
    b2: (2,)      -> (1, 128) f32 (zero-padded)
    """
    d_in, hidden = w1.shape
    n_out = w2.shape[1]
    d_p = _round_up(d_in, _LANE)
    n_p = _round_up(n_out, _LANE)

    w1_p = jnp.pad(w1, ((0, d_p - d_in), (0, 0))).astype(jnp.bfloat16)
    w2_p = jnp.pad(w2, ((0, 0), (0, n_p - n_out))).astype(jnp.bfloat16)
    b1_p = b1.reshape(1, hidden).astype(jnp.float32)
    b2_p = jnp.pad(b2.reshape(1, n_out), ((0, 0), (0, n_p - n_out))).astype(jnp.float32)
    return w1_p, b1_p, w2_p, b2_p


@functools.partial(jax.jit, static_argnames=("n_out", "tm"))
def sas_classifier_forward(x, w1_p, b1_p, w2_p, b2_p, n_out=_NUM_CLASSES, tm=512):
    """x: (B, 2*state_dim+action_dim) f32 -> (B, 2) f32 logits."""
    B, d_in = x.shape
    d_p, hidden = w1_p.shape
    n_p = w2_p.shape[1]

    # Pad batch: just to a sublane multiple for the small path, to a multiple
    # of the batch tile for the gridded path.
    if B <= tm:
        b_pad = _round_up(B, _SUBLANE)
    else:
        b_pad = _round_up(B, tm)

    # Zero-pad the contraction dim to 128 lanes and cast to bf16 for the MXU.
    x_p = jnp.pad(x, ((0, b_pad - B), (0, d_p - d_in))).astype(jnp.bfloat16)

    out_shape = jax.ShapeDtypeStruct((b_pad, n_p), jnp.float32)

    if b_pad <= tm:
        # Small batch: single invocation, whole arrays resident in VMEM,
        # no grid / pipeline machinery at all.
        out = pl.pallas_call(_sas_kernel, out_shape=out_shape)(
            x_p, w1_p, b1_p, w2_p, b2_p)
    else:
        # Large batch: tile the batch, keep weights/biases VMEM-resident via
        # constant index_maps; parallel axis lets v7x use both TensorCores.
        grid = (b_pad // tm,)
        out = pl.pallas_call(
            _sas_kernel,
            out_shape=out_shape,
            grid=grid,
            in_specs=[
                pl.BlockSpec((tm, d_p), lambda i: (i, 0)),
                pl.BlockSpec((d_p, hidden), lambda i: (0, 0)),
                pl.BlockSpec((1, hidden), lambda i: (0, 0)),
                pl.BlockSpec((hidden, n_p), lambda i: (0, 0)),
                pl.BlockSpec((1, n_p), lambda i: (0, 0)),
            ],
            out_specs=pl.BlockSpec((tm, n_p), lambda i: (i, 0)),
            compiler_params=pltpu.CompilerParams(
                dimension_semantics=("parallel",)),
        )(x_p, w1_p, b1_p, w2_p, b2_p)

    # Slice away the padded batch rows and the padded output lanes.
    return out[:B, :n_out]


def init_params(key, state_dim, action_dim, hidden=_HIDDEN):
    d_in = 2 * state_dim + action_dim
    k1, k2, k3, k4 = jax.random.split(key, 4)
    # Deterministic uniform init, PyTorch-Linear-style bounds (synthetic values).
    bound1 = 1.0 / jnp.sqrt(d_in)
    bound2 = 1.0 / jnp.sqrt(hidden)
    w1 = jax.random.uniform(k1, (d_in, hidden), jnp.float32, -bound1, bound1)
    b1 = jax.random.uniform(k2, (hidden,), jnp.float32, -bound1, bound1)
    w2 = jax.random.uniform(k3, (hidden, _NUM_CLASSES), jnp.float32, -bound2, bound2)
    b2 = jax.random.uniform(k4, (_NUM_CLASSES,), jnp.float32, -bound2, bound2)
    return w1, b1, w2, b2


if __name__ == "__main__":
    state_dim = 16
    action_dim = 8
    batch = 8

    key = jax.random.PRNGKey(0)
    k_params, k_x, k_x_big = jax.random.split(key, 3)
    w1, b1, w2, b2 = init_params(k_params, state_dim, action_dim)
    params = prepare_params(w1, b1, w2, b2)   # padded + bf16, done once

    d_in = 2 * state_dim + action_dim

    # --- small-batch path (no grid) ---
    # sas_input = concat(state, action, next_state) -> (B, 2*state_dim + action_dim)
    x = jax.random.normal(k_x, (batch, d_in), jnp.float32)
    logits = jax.block_until_ready(sas_classifier_forward(x, *params))

    ref = jnp.maximum(x @ w1 + b1, 0.0) @ w2 + b2
    assert logits.shape == (batch, _NUM_CLASSES)
    assert jnp.allclose(logits, ref, atol=2e-2, rtol=2e-2), (
        "max abs err (small path): %f" % float(jnp.max(jnp.abs(logits - ref))))

    # --- batch-tiled grid path (odd batch, exercises padding + parallel axis) ---
    big_batch = 1024 + 17
    x_big = jax.random.normal(k_x_big, (big_batch, d_in), jnp.float32)
    logits_big = jax.block_until_ready(sas_classifier_forward(x_big, *params))

    ref_big = jnp.maximum(x_big @ w1 + b1, 0.0) @ w2 + b2
    assert logits_big.shape == (big_batch, _NUM_CLASSES)
    assert jnp.allclose(logits_big, ref_big, atol=2e-2, rtol=2e-2), (
        "max abs err (grid path): %f" % float(jnp.max(jnp.abs(logits_big - ref_big))))

    print("KERNEL_OK")
</pallas_src>

<mosaic_0001>
module attributes {stable_mosaic.version = 11 : i64} {
  func.func @_sas_kernel(%arg0: memref<8x128xbf16, #tpu.memory_space<vmem>>, %arg1: memref<128x256xbf16, #tpu.memory_space<vmem>>, %arg2: memref<1x256xf32, #tpu.memory_space<vmem>>, %arg3: memref<256x128xbf16, #tpu.memory_space<vmem>>, %arg4: memref<1x128xf32, #tpu.memory_space<vmem>>, %arg5: memref<8x128xf32, #tpu.memory_space<vmem>>) attributes {dimension_semantics = [], scalar_prefetch = 0 : i64, scratch_operands = 0 : i64, tpu.core_type = #tpu.core_type<tc>} {
    %c0 = arith.constant 0 : index
    %c0_0 = arith.constant 0 : index
    %0 = vector.load %arg0[%c0, %c0_0] : memref<8x128xbf16, #tpu.memory_space<vmem>>, vector<8x128xbf16>
    %c0_1 = arith.constant 0 : index
    %c0_2 = arith.constant 0 : index
    %1 = vector.load %arg1[%c0_1, %c0_2] : memref<128x256xbf16, #tpu.memory_space<vmem>>, vector<128x256xbf16>
    %cst = arith.constant dense<0.000000e+00> : vector<8x256xf32>
    %2 = tpu.matmul %0, %1, %cst {dimension_numbers = #tpu.dot_dimension_numbers<[1], [0], [0], [1], [0, 0, 1, 1], [], []>} : vector<8x128xbf16>, vector<128x256xbf16>, vector<8x256xf32> -> vector<8x256xf32>
    %c0_3 = arith.constant 0 : index
    %c0_4 = arith.constant 0 : index
    %3 = vector.load %arg2[%c0_3, %c0_4] : memref<1x256xf32, #tpu.memory_space<vmem>>, vector<1x256xf32>
    %4 = vector.broadcast %3 : vector<1x256xf32> to vector<8x256xf32>
    %5 = arith.addf %2, %4 : vector<8x256xf32>
    %cst_5 = arith.constant 0.000000e+00 : f32
    %6 = vector.broadcast %cst_5 : f32 to vector<8x256xf32>
    %7 = arith.maximumf %5, %6 : vector<8x256xf32>
    %8 = arith.truncf %7 : vector<8x256xf32> to vector<8x256xbf16>
    %c0_6 = arith.constant 0 : index
    %c0_7 = arith.constant 0 : index
    %9 = vector.load %arg3[%c0_6, %c0_7] : memref<256x128xbf16, #tpu.memory_space<vmem>>, vector<256x128xbf16>
    %cst_8 = arith.constant dense<0.000000e+00> : vector<8x128xf32>
    %10 = tpu.matmul %8, %9, %cst_8 {dimension_numbers = #tpu.dot_dimension_numbers<[1], [0], [0], [1], [0, 0, 1, 1], [], []>} : vector<8x256xbf16>, vector<256x128xbf16>, vector<8x128xf32> -> vector<8x128xf32>
    %c0_9 = arith.constant 0 : index
    %c0_10 = arith.constant 0 : index
    %11 = vector.load %arg4[%c0_9, %c0_10] : memref<1x128xf32, #tpu.memory_space<vmem>>, vector<1x128xf32>
    %12 = vector.broadcast %11 : vector<1x128xf32> to vector<8x128xf32>
    %13 = arith.addf %10, %12 : vector<8x128xf32>
    %c0_11 = arith.constant 0 : index
    %c0_12 = arith.constant 0 : index
    %14 = vector.load %arg5[%c0_11, %c0_12] : memref<8x128xf32, #tpu.memory_space<vmem>>, vector<8x128xf32>
    tpu.vector_store %arg5[%c0_11, %c0_12], %13 {strides = array<i32>} : memref<8x128xf32, #tpu.memory_space<vmem>>, vector<8x128xf32>,
    return
  }
}

</mosaic_0001>

<bundles_post_ra>
// kernel: sas_classifier_forward.1
= control target key start
LH: loop header
LB: loop body
LE: loop exit
PB: predicated region body
PF: predicated region fallthrough
CT: control target
= control target key end

     0   :  { %10 = vsyncpa [#allocation3], 0  ;;  %s608_s0 = inlined_call_operand.vmem [shape: bf16[8,128], index: 0, kind: input, shape index: {}]   ;;  %s609_s1 = inlined_call_operand.hbm [shape: bf16[128,256], index: 1, kind: input, shape index: {}]   ;;  %s610_s2 = inlined_call_operand.vmem [shape: f32[1,256], index: 2, kind: input, shape index: {}]   ;;  %s611_s3 = inlined_call_operand.hbm [shape: bf16[256,128], index: 3, kind: input, shape index: {}]   ;;  %s612_s4 = inlined_call_operand.vmem [shape: f32[1,128], index: 4, kind: input, shape index: {}]   ;;  %s613_s5 = inlined_call_operand.vmem [shape: f32[8,128], index: 5, kind: output, shape index: {}]  }
   0x1   :  { %11 = vsyncpa [#allocation5], 0  ;;  %s535_s18 = smov [#allocation2]   ;;  %s487_s22 = scalar_lea.hbm %s609_s1, 2048 }
   0x2   :  { %s19_s19 = sshll.u32 %s535_s18, 4  ;;  %p488_p0 = scmp.ne.s32.totalorder %s609_s1, %s487_s22  ;;  %s20_s19 = int_to_ptr.vmem [resolvable:$true] %s19_s19 }
   0x3   :  { %p491_p1 = scmp.lt.u32.totalorder %s487_s22, %s609_s1 }
   0x5   :  { %p493_p2 = pnand %p491_p1, %p488_p0 }
   0x7   :  { %496 = shalt.err (!%p493_p2)
}
   0x8   :  { %s497_s27 = scalar_lea.vmem %s20_s19, 2048  ;;  %p502_p4 = scmp.lt.s32.totalorder %s20_s19, %s20_s19 }
   0x9   :  { %p498_p3 = scmp.ne.s32.totalorder %s20_s19, %s497_s27  ;;  %p503_p5 = scmp.lt.s32.totalorder %s497_s27, %s497_s27 }
   0xb   :  { %p504_p6 = por %p503_p5, %p502_p4 }
   0xd   :  { %p505_p7 = pnand %p504_p6, %p498_p3 }
   0xf   :  { %508 = shalt.err (!%p505_p7)
}
  0x10   :  { %s536_s28 = smov 128   ;;  %s537_s29 = smov 8  }
  0x11   :  { %25 = dma.hbm_to_vmem [thread:$0]  %s609_s1, 2048, %s20_s19, [#allocation3], %s536_s28, %s536_s28, %s537_s29  }
  0x12   :  { %s538_s7 = smov [#allocation4]   ;;  %s509_s11 = scalar_lea.hbm %s611_s3, 2048 }
  0x13   :  { %s33_s8 = sshll.u32 %s538_s7, 4  ;;  %p510_p8 = scmp.ne.s32.totalorder %s611_s3, %s509_s11  ;;  %s34_s8 = int_to_ptr.vmem [resolvable:$true] %s33_s8 }
  0x14   :  { %p513_p9 = scmp.lt.u32.totalorder %s509_s11, %s611_s3 }
  0x16   :  { %p515_p10 = pnand %p513_p9, %p510_p8 }
  0x18   :  { %518 = shalt.err (!%p515_p10)
}
  0x19   :  { %s519_s16 = scalar_lea.vmem %s34_s8, 2048  ;;  %p524_p12 = scmp.lt.s32.totalorder %s34_s8, %s34_s8 }
  0x1a   :  { %p520_p11 = scmp.ne.s32.totalorder %s34_s8, %s519_s16  ;;  %p525_p13 = scmp.lt.s32.totalorder %s519_s16, %s519_s16 }
  0x1c   :  { %p526_p0 = por %p525_p13, %p524_p12 }
  0x1e   :  { %p527_p1 = pnand %p526_p0, %p520_p11 }
  0x20   :  { %530 = shalt.err (!%p527_p1)
}
  0x21   :  { %s539_s1 = smov 64   ;;  %s540_s17 = smov 4  }
  0x22   :  { %39 = dma.hbm_to_vmem [thread:$0]  %s611_s3, 2048, %s34_s8, [#allocation5], %s539_s1, %s539_s1, %s540_s17  }
  0x23   :  { %531 = dma.done.wait [#allocation3], 2048  }
  0x24   :  { %532 = vsyncadd [#allocation3], 4294965248 }
  0x25   :  { %533 = dma.done.wait [#allocation5], 2048  }
  0x26   :  { %534 = vsyncadd [#allocation5], 4294965248  ;;  %v541_v0 = vmov 0   ;;  %v447_v1 = vld [vmem:[#allocation2 + $0x4] ss:$8 sps:$4 sm:$0xff]   ;;  %v475_v15 = vld [vmem:[#allocation4 + $0x50] sm:$0xff]   ;;  %v68_v34 = vlaneseq }
  0x27   :  { %190 = vmatprep.mubr.bf16.mxu0 %v541_v0  ;;  %v449_v2 = vld [vmem:[#allocation2] ss:$8 sps:$4 sm:$0xff]   ;;  %158 = vmatprep.subr.bf16.mxu0 %v447_v1  ;;  %v450_v3 = vld [vmem:[#allocation2 + $0x14] ss:$8 sps:$4 sm:$0xff]   ;;  %v452_v4 = vld [vmem:[#allocation2 + $0x10] ss:$8 sps:$4 sm:$0xff]  }
  0x28   :  { %159 = vmatpush1.bf16.msra.mxu0 %v449_v2  ;;  %v453_v5 = vld [vmem:[#allocation2 + $0x24] ss:$8 sps:$4 sm:$0xff]   ;;  %v455_v6 = vld [vmem:[#allocation2 + $0x20] ss:$8 sps:$4 sm:$0xff]   ;;  %v456_v7 = vld [vmem:[#allocation2 + $0x34] ss:$8 sps:$4 sm:$0xff]  }
  0x29   :  { %160 = vmatprep.subr.bf16.mxu0 %v450_v3  ;;  %v458_v8 = vld [vmem:[#allocation2 + $0x30] ss:$8 sps:$4 sm:$0xff]   ;;  %v459_v9 = vld [vmem:[#allocation2 + $0x44] ss:$8 sps:$4 sm:$0xff]   ;;  %v461_v12 = vld [vmem:[#allocation2 + $0x40] ss:$8 sps:$4 sm:$0xff]  }
  0x2a   :  { %v471_v10 = vld [vmem:[#allocation4 + $0x40] sm:$0xff]   ;;  %v473_v13 = vld [vmem:[#allocation4 + $0x48] sm:$0xff]   ;;  %v462_v16 = vld [vmem:[#allocation2 + $0x54] ss:$8 sps:$4 sm:$0xff]   ;;  %v69_v35 = vshrl.u32 %v68_v34, 7 }
  0x2b   :  { %v472_v11 = vld [vmem:[#allocation4] sm:$0xff]   ;;  %418 = vmatprep.subr.bf16.mxu1 %v471_v10  ;;  %v474_v14 = vld [vmem:[#allocation4 + $0x8] sm:$0xff]   ;;  %v464_v17 = vld [vmem:[#allocation2 + $0x50] ss:$8 sps:$4 sm:$0xff]  }
  0x2c   :  { %161 = vmatpush1.bf16.msra.mxu0 %v452_v4  ;;  %419 = vmatpush3.bf16.msra.mxu1 %v472_v11  ;;  %v476_v18 = vld [vmem:[#allocation4 + $0x10] sm:$0xff]   ;;  %v477_v19 = vld [vmem:[#allocation4 + $0x58] sm:$0xff]   ;;  %v465_v20 = vld [vmem:[#allocation2 + $0x64] ss:$8 sps:$4 sm:$0xff]   ;;  %v70_v36 = vsub.s32 0, %v69_v35  ;;  %v74_v38 = vsub.s32 1, %v69_v35 }
  0x2d   :  { %162 = vmatprep.subr.bf16.mxu0 %v453_v5  ;;  %420 = vmatprep.subr.bf16.mxu1 %v473_v13  ;;  %v467_v21 = vld [vmem:[#allocation2 + $0x60] ss:$8 sps:$4 sm:$0xff]   ;;  %v468_v22 = vld [vmem:[#allocation2 + $0x74] ss:$8 sps:$4 sm:$0xff]   ;;  %v470_v26 = vld [vmem:[#allocation2 + $0x70] ss:$8 sps:$4 sm:$0xff]  }
  0x2e   :  { %v478_v23 = vld [vmem:[#allocation4 + $0x18] sm:$0xff]   ;;  %v479_v24 = vld [vmem:[#allocation4 + $0x60] sm:$0xff]   ;;  %v481_v27 = vld [vmem:[#allocation4 + $0x68] sm:$0xff]  }
  0x2f   :  { %v480_v25 = vld [vmem:[#allocation4 + $0x20] sm:$0xff]   ;;  %v482_v28 = vld [vmem:[#allocation4 + $0x28] sm:$0xff]   ;;  %v483_v30 = vld [vmem:[#allocation4 + $0x70] sm:$0xff]  }
  0x30   :  { %163 = vmatpush1.bf16.msra.mxu0 %v455_v6  ;;  %421 = vmatpush3.bf16.msra.mxu1 %v474_v14  ;;  %v49_v29 = vld [vmem:[%s608_s0] sm:$0xf]  ;;  %v484_v31 = vld [vmem:[#allocation4 + $0x30] sm:$0xff]   ;;  %v485_v32 = vld [vmem:[#allocation4 + $0x78] sm:$0xff]  }
  0x31   :  { %164 = vmatprep.subr.bf16.mxu0 %v456_v7  ;;  %422 = vmatprep.subr.bf16.mxu1 %v475_v15  ;;  %v486_v33 = vld [vmem:[#allocation4 + $0x38] sm:$0xff]   ;;  %v66_v37 = vld [vmem:[%s610_s2] sm:$0x3] }
  0x32   :  { %v71_v39 = vrot.slane %v66_v37, %v70_v36  ;;  %v75_v40 = vrot.slane %v66_v37, %v74_v38  ;;  %v401_v52 = vld [vmem:[%s612_s4] ss:$0 sm:$0xff] }
  0x34   :  { %165 = vmatpush1.bf16.msra.mxu0 %v458_v8  ;;  %423 = vmatpush3.bf16.msra.mxu1 %v476_v18 }
  0x35   :  { %166 = vmatprep.subr.bf16.mxu0 %v459_v9  ;;  %424 = vmatprep.subr.bf16.mxu1 %v477_v19 }
  0x38   :  { %167 = vmatpush1.bf16.msra.mxu0 %v461_v12  ;;  %425 = vmatpush3.bf16.msra.mxu1 %v478_v23 }
  0x39   :  { %168 = vmatprep.subr.bf16.mxu0 %v462_v16  ;;  %426 = vmatprep.subr.bf16.mxu1 %v479_v24 }
  0x3c   :  { %169 = vmatpush1.bf16.msra.mxu0 %v464_v17  ;;  %427 = vmatpush3.bf16.msra.mxu1 %v480_v25 }
  0x3d   :  { %170 = vmatprep.subr.bf16.mxu0 %v465_v20  ;;  %428 = vmatprep.subr.bf16.mxu1 %v481_v27 }
  0x40   :  { %171 = vmatpush1.bf16.msra.mxu0 %v467_v21  ;;  %429 = vmatpush3.bf16.msra.mxu1 %v482_v28 }
  0x41   :  { %172 = vmatprep.subr.bf16.mxu0 %v468_v22  ;;  %430 = vmatprep.subr.bf16.mxu1 %v483_v30 }
  0x44   :  { %173 = vmatpush1.bf16.msra.mxu0 %v470_v26  ;;  %431 = vmatpush3.bf16.msra.mxu1 %v484_v31 }
  0x45   :  { %432 = vmatprep.subr.bf16.mxu1 %v485_v32 }
  0x47   :  { %191 = vmatmul.mubr.bf16.vlgmr.msra.gmra.mrb[0].mxu0 %v49_v29 }
  0x48   :  { %433 = vmatpush3.bf16.msra.mxu1 %v486_v33 }
 0x11a   :  { %v192_v41 = vpop.f32.mrb[0].mxu0 }
 0x11b   :  { %v193_v42 = vadd.f32 %v192_v41, %v71_v39  ;;  %v194_v43 = vpop.f32.mrb[1].mxu0 }
 0x11c   :  { %v195_v44 = vadd.f32 %v194_v43, %v75_v40  ;;  %v196_v45 = vpop.f32.mrb[2].mxu0 }
 0x11d   :  { %v199_v46 = vmax.f32 %v193_v42, 0.0  ;;  %v197_v47 = vpop.f32.mrb[3].mxu0 }
 0x11e   :  { %v200_v48 = vmax.f32 %v195_v44, 0.0 }
 0x11f   :  { %v201_v50 = vpack.c.bf16 %v199_v46, %v199_v46 }
 0x120   :  { %v202_v49 = vpack.c.bf16 %v200_v48, %v200_v48 }
 0x122   :  { %370 = vmatprep.mubr.bf16.mxu1 %v202_v49 }
 0x123   :  { %371 = vmatmul.mubr.bf16.vlgmr.msra.gmra.mrb[0].mxu1 %v201_v50 }
 0x1f6   :  { %v434_v51 = vpop.f32.mrb[0].mxu1 }
 0x1f7   :  { %v435_v53 = vpop.f32.mrb[1].mxu1 }
 0x1f8   :  { %v436_v54 = vadd.f32 %v435_v53, %v434_v51  ;;  %v437_v55 = vpop.f32.mrb[2].mxu1 }
 0x1f9   :  { %v438_v56 = vpop.f32.mrb[3].mxu1 }
 0x1fa   :  { %v373_v57 = vadd.f32 %v436_v54, %v401_v52 }
 0x1fc   :  { %378 = vst [vmem:[%s613_s5] sm:$0xff] %v373_v57 }
 0x1fd   :  { %383 = vsyncpa [#allocation3], 1 }
 0x1fe   :  { %384 = vsyncpa [#allocation5], 1 }

</bundles_post_ra>
